<compile_context>
chip_gen: v7x
topology: tpu7x:2x2x1
jax: 0.10.0
libtpu: 0.0.40
codegen_flags: <defaults>
</compile_context>

<pallas_src>
import functools

import jax
import jax.numpy as jnp
from jax.experimental import pallas as pl
from jax.experimental.pallas import tpu as pltpu

SMOOTH = 1e-06
LANE = 128
_SUB = 8          # f32 sublane height; accumulator/fold height


def _round_up(x, m):
    return ((x + m - 1) // m) * m


def _cdiv(a, b):
    return (a + b - 1) // b


def dice_kernel(pred_ref, true_ref, out_ref, *, rows, tile_rows, tiles_per_core):
    """Grid = (core_split, tiles_per_core) over (rows, 128) f32 tiles.

    out_ref : (2, 8, 128) f32 per-core accumulator (also the output):
              [0] = running sum(p * t),  [1] = running sum(p) + sum(t).
    """
    c = pl.program_id(0)
    i = pl.program_id(1)

    @pl.when(i == 0)
    def _init():
        out_ref[...] = jnp.zeros_like(out_ref)

    tr, lane = pred_ref.shape
    x = pred_ref[...].astype(jnp.float32)
    # sigmoid(x) == 0.5 * tanh(0.5 * x) + 0.5 : routes the transcendental to
    # the EUP slot and keeps the VALU slot clear of a divide lowering.
    p = 0.5 * jnp.tanh(0.5 * x) + 0.5
    t = true_ref[...].astype(jnp.float32)

    def fold(v):  # (tr, 128) -> (8, 128): pure sublane-grouped VPU vreg adds
        return jnp.sum(v.reshape(-1, _SUB, lane), axis=0)

    def accumulate(pv, tv):
        out_ref[0] += fold(pv * tv)   # sum(p * t)
        out_ref[1] += fold(pv + tv)   # sum(p) + sum(t)

    # Tile-local residual row count (scalar math only; no global flat index).
    rem_rows = rows - (c * tiles_per_core + i) * tile_rows

    @pl.when(rem_rows >= tr)          # fast path: full tile, no masking work
    def _full_tile():
        accumulate(p, t)

    @pl.when(rem_rows < tr)           # only the ragged / duplicate last tile(s)
    def _ragged_tile():
        row_ids = jax.lax.broadcasted_iota(jnp.int32, (tr, lane), 0)
        keep = row_ids < rem_rows     # rem_rows <= 0 -> contributes exactly 0
        accumulate(jnp.where(keep, p, 0.0), jnp.where(keep, t, 0.0))


@functools.partial(jax.jit, static_argnames=("tile_rows", "splits"))
def dice_loss(pred_mask, true_mask, *, tile_rows=4096, splits=2):
    """Matches DiceLoss.forward(pred_mask, true_mask)."""
    p_flat = pred_mask.reshape(-1)    # keep native dtype; cast in-kernel
    t_flat = true_mask.reshape(-1)
    n = p_flat.shape[0]

    rows = n // LANE                  # full 128-lane rows handled by the kernel
    n_main = rows * LANE

    inter = jnp.float32(0.0)
    total = jnp.float32(0.0)

    if rows > 0:
        # n % 128 == 0  ->  pure reshape, no slice, no copy.
        # Otherwise XLA may materialize the prefix slice (one extra pass over
        # the prefix), but never a pad/rewrite of both operands.
        p_main = p_flat if n_main == n else p_flat[:n_main]
        t_main = t_flat if n_main == n else t_flat[:n_main]
        p2 = p_main.reshape(rows, LANE)
        t2 = t_main.reshape(rows, LANE)

        tr = _round_up(min(max(int(tile_rows), _SUB), rows), _SUB)
        total_blocks = _cdiv(rows, tr)
        n_splits = max(1, min(int(splits), total_blocks))   # 2-way TC split on v7x
        tiles_per_core = _cdiv(total_blocks, n_splits)

        kernel = functools.partial(
            dice_kernel, rows=rows, tile_rows=tr, tiles_per_core=tiles_per_core)

        def in_index(c, i):
            # Clamp so a core's trailing (duplicate) step never indexes past the
            # array; its contribution is zeroed by the rem_rows mask.
            return (jnp.minimum(c * tiles_per_core + i, total_blocks - 1), 0)

        partials = pl.pallas_call(
            kernel,
            out_shape=jax.ShapeDtypeStruct((n_splits, 2, _SUB, LANE), jnp.float32),
            grid_spec=pltpu.PrefetchScalarGridSpec(
                num_scalar_prefetch=0,
                grid=(n_splits, tiles_per_core),
                in_specs=[
                    pl.BlockSpec((tr, LANE), in_index),
                    pl.BlockSpec((tr, LANE), in_index),
                ],
                out_specs=pl.BlockSpec((None, 2, _SUB, LANE),
                                       lambda c, i: (c, 0, 0, 0)),
            ),
            compiler_params=pltpu.CompilerParams(
                dimension_semantics=("parallel", "arbitrary")),
        )(p2, t2)

        sums = jnp.sum(partials, axis=(0, 2, 3))   # (2,): [sum(p*t), sum(p)+sum(t)]
        inter = inter + sums[0]
        total = total + sums[1]

    if n_main < n:   # <= 127-element ragged tail: plain JAX, no pad
        p_tail = jax.nn.sigmoid(p_flat[n_main:].astype(jnp.float32))
        t_tail = t_flat[n_main:].astype(jnp.float32)
        inter = inter + jnp.sum(p_tail * t_tail)
        total = total + jnp.sum(p_tail) + jnp.sum(t_tail)

    return 1.0 - (2.0 * inter + SMOOTH) / (total + SMOOTH)


def dice_loss_ref(pred_mask, true_mask):
    p = jax.nn.sigmoid(pred_mask).reshape(-1).astype(jnp.float32)
    t = true_mask.reshape(-1).astype(jnp.float32)
    inter = jnp.sum(p * t)
    total = jnp.sum(p) + jnp.sum(t)
    return 1.0 - (2.0 * inter + SMOOTH) / (total + SMOOTH)


def _check(shape, key, **kw):
    k_pred, k_true = jax.random.split(key)
    pred = jax.random.normal(k_pred, shape, dtype=jnp.float32)
    true = (jax.random.uniform(k_true, shape) > 0.5).astype(jnp.float32)
    loss = jax.block_until_ready(dice_loss(pred, true, **kw))
    ref = jax.block_until_ready(dice_loss_ref(pred, true))
    assert jnp.allclose(loss, ref, atol=1e-5, rtol=1e-5), (shape, kw, loss, ref)


if __name__ == "__main__":
    key = jax.random.PRNGKey(0)
    keys = jax.random.split(key, 4)

    # Primary small test consistent with a segmentation mask: N=2, C=4, H=W=16.
    _check((2, 4, 16, 16), keys[0])
    # Ragged element count: exercises the masked partial block + JAX tail.
    _check((3, 5, 17, 23), keys[1])
    # Aligned, 2-way core split with a masked partial last block (no tail).
    _check((4, 3, 224, 224), keys[2])
    # Multi-tile per core + clamped duplicate block + ragged tail.
    _check((2, 3, 250, 250), keys[3], tile_rows=1024)

    print("KERNEL_OK")
</pallas_src>

<mosaic_0001>
module attributes {stable_mosaic.version = 11 : i64} {
  func.func @dice_kernel(%arg0: i32, %arg1: i32, %arg2: memref<16x128xf32, #tpu.memory_space<vmem>>, %arg3: memref<16x128xf32, #tpu.memory_space<vmem>>, %arg4: memref<1x2x8x128xf32, #tpu.memory_space<vmem>>) attributes {dimension_semantics = [#tpu.dimension_semantics<parallel>, #tpu.dimension_semantics<arbitrary>], iteration_bounds = array<i64: 1, 1>, scalar_prefetch = 0 : i64, scratch_operands = 0 : i64, tpu.core_type = #tpu.core_type<tc>, window_params = [{transform_indices = @transform_0, window_bounds = array<i64: 16, 128>}, {transform_indices = @transform_1, window_bounds = array<i64: 16, 128>}, {transform_indices = @transform_2, window_bounds = array<i64: 1, 2, 8, 128>}]} {
    %c0_i32 = arith.constant 0 : i32
    %0 = arith.cmpi eq, %arg1, %c0_i32 : i32
    %1 = arith.extui %0 : i1 to i32
    %c0_i32_0 = arith.constant 0 : i32
    %2 = arith.cmpi ne, %1, %c0_i32_0 : i32
    scf.if %2 {
      %cst_11 = arith.constant 0.000000e+00 : f32
      %22 = vector.broadcast %cst_11 : f32 to vector<2x8x128xf32>
      %c0_12 = arith.constant 0 : index
      %c0_13 = arith.constant 0 : index
      %c0_14 = arith.constant 0 : index
      %c0_15 = arith.constant 0 : index
      %23 = vector.load %arg4[%c0_12, %c0_13, %c0_14, %c0_15] : memref<1x2x8x128xf32, #tpu.memory_space<vmem>>, vector<1x2x8x128xf32>
      %24 = vector.shape_cast %23 : vector<1x2x8x128xf32> to vector<2x8x128xf32>
      %25 = vector.shape_cast %22 : vector<2x8x128xf32> to vector<1x2x8x128xf32>
      tpu.vector_store %arg4[%c0_12, %c0_13, %c0_14, %c0_15], %25 {strides = array<i32>} : memref<1x2x8x128xf32, #tpu.memory_space<vmem>>, vector<1x2x8x128xf32>,
    } else {
    }
    %c0 = arith.constant 0 : index
    %c0_1 = arith.constant 0 : index
    %3 = vector.load %arg2[%c0, %c0_1] : memref<16x128xf32, #tpu.memory_space<vmem>>, vector<16x128xf32>
    %cst = arith.constant 5.000000e-01 : f32
    %4 = vector.broadcast %cst : f32 to vector<16x128xf32>
    %5 = arith.mulf %4, %3 : vector<16x128xf32>
    %6 = math.tanh %5 : vector<16x128xf32>
    %cst_2 = arith.constant 5.000000e-01 : f32
    %7 = vector.broadcast %cst_2 : f32 to vector<16x128xf32>
    %8 = arith.mulf %7, %6 : vector<16x128xf32>
    %cst_3 = arith.constant 5.000000e-01 : f32
    %9 = vector.broadcast %cst_3 : f32 to vector<16x128xf32>
    %10 = arith.addf %8, %9 : vector<16x128xf32>
    %c0_4 = arith.constant 0 : index
    %c0_5 = arith.constant 0 : index
    %11 = vector.load %arg3[%c0_4, %c0_5] : memref<16x128xf32, #tpu.memory_space<vmem>>, vector<16x128xf32>
    %c1_i32 = arith.constant 1 : i32
    %12 = arith.muli %arg0, %c1_i32 : i32
    %13 = arith.addi %12, %arg1 : i32
    %c16_i32 = arith.constant 16 : i32
    %14 = arith.muli %13, %c16_i32 : i32
    %c16_i32_6 = arith.constant 16 : i32
    %15 = arith.subi %c16_i32_6, %14 : i32
    %c16_i32_7 = arith.constant 16 : i32
    %16 = arith.cmpi sge, %15, %c16_i32_7 : i32
    %17 = arith.extui %16 : i1 to i32
    %c0_i32_8 = arith.constant 0 : i32
    %18 = arith.cmpi ne, %17, %c0_i32_8 : i32
    scf.if %18 {
      %c0_11 = arith.constant 0 : index
      %c0_12 = arith.constant 0 : index
      %c0_13 = arith.constant 0 : index
      %c0_14 = arith.constant 0 : index
      %22 = vector.load %arg4[%c0_11, %c0_12, %c0_13, %c0_14] : memref<1x2x8x128xf32, #tpu.memory_space<vmem>>, vector<1x1x8x128xf32>
      %23 = vector.shape_cast %22 : vector<1x1x8x128xf32> to vector<8x128xf32>
      %24 = arith.mulf %10, %11 : vector<16x128xf32>
      %25 = vector.shape_cast %24 : vector<16x128xf32> to vector<2x8x128xf32>
      %cst_15 = arith.constant dense<0.000000e+00> : vector<8x128xf32>
      %26 = vector.multi_reduction <add>, %25, %cst_15 [0] : vector<2x8x128xf32> to vector<8x128xf32>
      %27 = arith.addf %23, %26 : vector<8x128xf32>
      %c0_16 = arith.constant 0 : index
      %c0_17 = arith.constant 0 : index
      %c0_18 = arith.constant 0 : index
      %c0_19 = arith.constant 0 : index
      %28 = vector.load %arg4[%c0_16, %c0_17, %c0_18, %c0_19] : memref<1x2x8x128xf32, #tpu.memory_space<vmem>>, vector<1x1x8x128xf32>
      %29 = vector.shape_cast %28 : vector<1x1x8x128xf32> to vector<8x128xf32>
      %30 = vector.shape_cast %27 : vector<8x128xf32> to vector<1x1x8x128xf32>
      tpu.vector_store %arg4[%c0_16, %c0_17, %c0_18, %c0_19], %30 {strides = array<i32>} : memref<1x2x8x128xf32, #tpu.memory_space<vmem>>, vector<1x1x8x128xf32>,
      %c0_20 = arith.constant 0 : index
      %c1 = arith.constant 1 : index
      %c0_21 = arith.constant 0 : index
      %c0_22 = arith.constant 0 : index
      %31 = vector.load %arg4[%c0_20, %c1, %c0_21, %c0_22] : memref<1x2x8x128xf32, #tpu.memory_space<vmem>>, vector<1x1x8x128xf32>
      %32 = vector.shape_cast %31 : vector<1x1x8x128xf32> to vector<8x128xf32>
      %33 = arith.addf %10, %11 : vector<16x128xf32>
      %34 = vector.shape_cast %33 : vector<16x128xf32> to vector<2x8x128xf32>
      %cst_23 = arith.constant dense<0.000000e+00> : vector<8x128xf32>
      %35 = vector.multi_reduction <add>, %34, %cst_23 [0] : vector<2x8x128xf32> to vector<8x128xf32>
      %36 = arith.addf %32, %35 : vector<8x128xf32>
      %c0_24 = arith.constant 0 : index
      %c1_25 = arith.constant 1 : index
      %c0_26 = arith.constant 0 : index
      %c0_27 = arith.constant 0 : index
      %37 = vector.load %arg4[%c0_24, %c1_25, %c0_26, %c0_27] : memref<1x2x8x128xf32, #tpu.memory_space<vmem>>, vector<1x1x8x128xf32>
      %38 = vector.shape_cast %37 : vector<1x1x8x128xf32> to vector<8x128xf32>
      %39 = vector.shape_cast %36 : vector<8x128xf32> to vector<1x1x8x128xf32>
      tpu.vector_store %arg4[%c0_24, %c1_25, %c0_26, %c0_27], %39 {strides = array<i32>} : memref<1x2x8x128xf32, #tpu.memory_space<vmem>>, vector<1x1x8x128xf32>,
    } else {
    }
    %c16_i32_9 = arith.constant 16 : i32
    %19 = arith.cmpi slt, %15, %c16_i32_9 : i32
    %20 = arith.extui %19 : i1 to i32
    %c0_i32_10 = arith.constant 0 : i32
    %21 = arith.cmpi ne, %20, %c0_i32_10 : i32
    scf.if %21 {
      %22 = tpu.iota {dimensions = array<i32: 0>} : vector<16x128xi32>
      %23 = vector.broadcast %15 : i32 to vector<16x128xi32>
      %24 = arith.cmpi slt, %22, %23 : vector<16x128xi32>
      %cst_11 = arith.constant 0.000000e+00 : f32
      %25 = vector.broadcast %cst_11 : f32 to vector<16x128xf32>
      %26 = arith.select %24, %10, %25 : vector<16x128xi1>, vector<16x128xf32>
      %cst_12 = arith.constant 0.000000e+00 : f32
      %27 = vector.broadcast %cst_12 : f32 to vector<16x128xf32>
      %28 = arith.select %24, %11, %27 : vector<16x128xi1>, vector<16x128xf32>
      %c0_13 = arith.constant 0 : index
      %c0_14 = arith.constant 0 : index
      %c0_15 = arith.constant 0 : index
      %c0_16 = arith.constant 0 : index
      %29 = vector.load %arg4[%c0_13, %c0_14, %c0_15, %c0_16] : memref<1x2x8x128xf32, #tpu.memory_space<vmem>>, vector<1x1x8x128xf32>
      %30 = vector.shape_cast %29 : vector<1x1x8x128xf32> to vector<8x128xf32>
      %31 = arith.mulf %26, %28 : vector<16x128xf32>
      %32 = vector.shape_cast %31 : vector<16x128xf32> to vector<2x8x128xf32>
      %cst_17 = arith.constant dense<0.000000e+00> : vector<8x128xf32>
      %33 = vector.multi_reduction <add>, %32, %cst_17 [0] : vector<2x8x128xf32> to vector<8x128xf32>
      %34 = arith.addf %30, %33 : vector<8x128xf32>
      %c0_18 = arith.constant 0 : index
      %c0_19 = arith.constant 0 : index
      %c0_20 = arith.constant 0 : index
      %c0_21 = arith.constant 0 : index
      %35 = vector.load %arg4[%c0_18, %c0_19, %c0_20, %c0_21] : memref<1x2x8x128xf32, #tpu.memory_space<vmem>>, vector<1x1x8x128xf32>
      %36 = vector.shape_cast %35 : vector<1x1x8x128xf32> to vector<8x128xf32>
      %37 = vector.shape_cast %34 : vector<8x128xf32> to vector<1x1x8x128xf32>
      tpu.vector_store %arg4[%c0_18, %c0_19, %c0_20, %c0_21], %37 {strides = array<i32>} : memref<1x2x8x128xf32, #tpu.memory_space<vmem>>, vector<1x1x8x128xf32>,
      %c0_22 = arith.constant 0 : index
      %c1 = arith.constant 1 : index
      %c0_23 = arith.constant 0 : index
      %c0_24 = arith.constant 0 : index
      %38 = vector.load %arg4[%c0_22, %c1, %c0_23, %c0_24] : memref<1x2x8x128xf32, #tpu.memory_space<vmem>>, vector<1x1x8x128xf32>
      %39 = vector.shape_cast %38 : vector<1x1x8x128xf32> to vector<8x128xf32>
      %40 = arith.addf %26, %28 : vector<16x128xf32>
      %41 = vector.shape_cast %40 : vector<16x128xf32> to vector<2x8x128xf32>
      %cst_25 = arith.constant dense<0.000000e+00> : vector<8x128xf32>
      %42 = vector.multi_reduction <add>, %41, %cst_25 [0] : vector<2x8x128xf32> to vector<8x128xf32>
      %43 = arith.addf %39, %42 : vector<8x128xf32>
      %c0_26 = arith.constant 0 : index
      %c1_27 = arith.constant 1 : index
      %c0_28 = arith.constant 0 : index
      %c0_29 = arith.constant 0 : index
      %44 = vector.load %arg4[%c0_26, %c1_27, %c0_28, %c0_29] : memref<1x2x8x128xf32, #tpu.memory_space<vmem>>, vector<1x1x8x128xf32>
      %45 = vector.shape_cast %44 : vector<1x1x8x128xf32> to vector<8x128xf32>
      %46 = vector.shape_cast %43 : vector<8x128xf32> to vector<1x1x8x128xf32>
      tpu.vector_store %arg4[%c0_26, %c1_27, %c0_28, %c0_29], %46 {strides = array<i32>} : memref<1x2x8x128xf32, #tpu.memory_space<vmem>>, vector<1x1x8x128xf32>,
    } else {
    }
    return
  }
  func.func @transform_0(%arg0: i32, %arg1: i32) -> (i32, i32) {
    %c1_i32 = arith.constant 1 : i32
    %0 = arith.muli %arg0, %c1_i32 : i32
    %1 = arith.addi %0, %arg1 : i32
    %c0_i32 = arith.constant 0 : i32
    %2 = arith.minsi %1, %c0_i32 : i32
    %c0_i32_0 = arith.constant 0 : i32
    %c0_i32_1 = arith.constant 0 : i32
    return %2, %c0_i32_0 : i32, i32
  }
  func.func @transform_1(%arg0: i32, %arg1: i32) -> (i32, i32) {
    %c1_i32 = arith.constant 1 : i32
    %0 = arith.muli %arg0, %c1_i32 : i32
    %1 = arith.addi %0, %arg1 : i32
    %c0_i32 = arith.constant 0 : i32
    %2 = arith.minsi %1, %c0_i32 : i32
    %c0_i32_0 = arith.constant 0 : i32
    %c0_i32_1 = arith.constant 0 : i32
    return %2, %c0_i32_0 : i32, i32
  }
  func.func @transform_2(%arg0: i32, %arg1: i32) -> (i32, i32, i32, i32) {
    %c0_i32 = arith.constant 0 : i32
    %c0_i32_0 = arith.constant 0 : i32
    %c0_i32_1 = arith.constant 0 : i32
    %c0_i32_2 = arith.constant 0 : i32
    return %arg0, %c0_i32, %c0_i32_0, %c0_i32_1 : i32, i32, i32, i32
  }
}

</mosaic_0001>

<bundles_post_ra>
// kernel: dice_loss.1
= control target key start
LH: loop header
LB: loop body
LE: loop exit
PB: predicated region body
PF: predicated region fallthrough
CT: control target
= control target key end

     0   :  { %s198_s0 = inlined_call_operand.vmem [shape: f32[16,128], index: 0, kind: input, shape index: {}]   ;;  %s199_s1 = inlined_call_operand.vmem [shape: f32[16,128], index: 1, kind: input, shape index: {}]   ;;  %s200_s2 = inlined_call_operand.vmem [shape: f32[1,2,8,128], index: 2, kind: output, shape index: {}]  }
   0x1   :  { %v81_v0 = vld [vmem:[%s198_s0] sm:$0xff]  ;;  %v82_v1 = vld [vmem:[%s198_s0 + $0x8] sm:$0xff] }
   0x2   :  { %v83_v2 = vmul.f32 0.5, %v81_v0  ;;  %v84_v3 = vmul.f32 0.5, %v82_v1  ;;  %v91_v8 = vld [vmem:[%s199_s1] sm:$0xff]  ;;  %v92_v10 = vld [vmem:[%s199_s1 + $0x8] sm:$0xff] }
   0x4   :  { %161 = vtanh.f32 %v83_v2 }
   0x5   :  { %163 = vtanh.f32 %v84_v3 }
   0xe   :  { %v162_v4 = vpop.eup %161 }
   0xf   :  { %v164_v5 = vpop.eup %163  ;;  %v87_v6 = vmul.f32 0.5, %v162_v4 }
  0x10   :  { %v88_v7 = vmul.f32 0.5, %v164_v5 }
  0x11   :  { %v89_v9 = vadd.f32 0.5, %v87_v6 }
  0x12   :  { %v90_v11 = vadd.f32 0.5, %v88_v7 }
  0x13   :  { %v101_v12 = vmul.f32 %v91_v8, %v89_v9  ;;  %v108_v13 = vadd.f32 %v91_v8, %v89_v9 }
  0x14   :  { %v102_v14 = vmul.f32 %v92_v10, %v90_v11  ;;  %v109_v15 = vadd.f32 %v92_v10, %v90_v11 }
  0x16   :  { %v103_v16 = vadd.f32 %v102_v14, %v101_v12  ;;  %v110_v17 = vadd.f32 %v109_v15, %v108_v13 }
  0x18   :  { %105 = vst [vmem:[%s200_s2] sm:$0xff] %v103_v16  ;;  %157 = vst [vmem:[%s200_s2 + $0x8] sm:$0xff] %v110_v17 }

</bundles_post_ra>
